<compile_context>
chip_gen: v7x
topology: tpu7x:2x2x1
jax: 0.10.0
libtpu: 0.0.40
codegen_flags: <defaults>
</compile_context>

<pallas_src>
import functools

import jax
import jax.numpy as jnp
from jax.experimental import pallas as pl
from jax.experimental.pallas import tpu as pltpu

INPUT_SIZE = 30
NUM_CLASSES = 2
LANES = 128
TB_DEFAULT = 8192  # batch rows (lanes) per grid step; ~1 MiB x-tile in VMEM

# TSKONE(x, s) with s == ones_like(x)  (the "material 1" branch).
# TODO(synk): the exact polynomial coefficients live in the external `tskone`
# package; a deterministic quadratic device-response over [30, 45] is used here.
_TSK_A = -2.0e-3
_TSK_B = 2.0e-1
_TSK_C = -3.0


def _round_up(n, m):
    return ((n + m - 1) // m) * m


def seqnet_kernel(x_ref, w_ref, b_ref, o_ref):
    # x_ref: (INPUT_SIZE, TB)            f32  feature-major activation tile
    # w_ref: (NUM_CLASSES, INPUT_SIZE)   f32
    # b_ref: (NUM_CLASSES, 1)            f32
    # o_ref: (NUM_CLASSES, TB)           f32  log-probabilities (class-major)
    x = x_ref[...]

    # --- TSKONE elementwise nonlinearity (s == 1 branch), lane-dense ---
    xt = _TSK_A * x * x + _TSK_B * x + _TSK_C

    # --- Linear layer: (2, 30) @ (30, TB) on the MXU ---
    z = jnp.dot(w_ref[...], xt, preferred_element_type=jnp.float32) + b_ref[...]

    # --- abs + 2-class log_softmax along the class (sublane) axis ---
    a = jnp.abs(z)                                   # (2, TB)
    a0 = a[0:1, :]
    a1 = a[1:2, :]
    m = jnp.maximum(a0, a1)                          # (1, TB)
    lse = m + jnp.log(1.0 + jnp.exp(-jnp.abs(a0 - a1)))
    o_ref[...] = a - lse                             # broadcast over class rows


@functools.partial(jax.jit, static_argnames=("tb",))
def seqnet_forward(x, w, b, *, tb=TB_DEFAULT):
    """x: (..., INPUT_SIZE); w: (NUM_CLASSES, INPUT_SIZE); b: (NUM_CLASSES,)."""
    x2 = x.reshape(-1, INPUT_SIZE).astype(jnp.float32)   # x.view(-1, INPUT_SIZE)
    B = x2.shape[0]

    # Lane-aligned tile size; small batches use a single, just-big-enough tile.
    tb = min(tb, _round_up(B, LANES))
    b_pad = _round_up(B, tb)

    # Feature-major layout (features -> sublanes, batch -> lanes).
    xT = jnp.transpose(x2)                                # (INPUT_SIZE, B)
    if b_pad != B:
        xT = jnp.pad(xT, ((0, 0), (0, b_pad - B)))

    w32 = w.astype(jnp.float32)                           # (2, 30)
    b2 = b.reshape(NUM_CLASSES, 1).astype(jnp.float32)    # (2, 1)

    out_t = pl.pallas_call(
        seqnet_kernel,
        out_shape=jax.ShapeDtypeStruct((NUM_CLASSES, b_pad), jnp.float32),
        grid=(b_pad // tb,),
        in_specs=[
            pl.BlockSpec((INPUT_SIZE, tb), lambda i: (0, i)),
            pl.BlockSpec((NUM_CLASSES, INPUT_SIZE), lambda i: (0, 0)),
            pl.BlockSpec((NUM_CLASSES, 1), lambda i: (0, 0)),
        ],
        out_specs=pl.BlockSpec((NUM_CLASSES, tb), lambda i: (0, i)),
        compiler_params=pltpu.CompilerParams(
            dimension_semantics=("parallel",),
            vmem_limit_bytes=32 * 1024 * 1024,
        ),
        cost_estimate=pl.CostEstimate(
            flops=2 * b_pad * INPUT_SIZE * NUM_CLASSES + 12 * b_pad,
            transcendentals=2 * b_pad,
            bytes_accessed=4 * (b_pad * INPUT_SIZE + b_pad * NUM_CLASSES
                                + INPUT_SIZE * NUM_CLASSES + NUM_CLASSES),
        ),
    )(xT, w32, b2)

    return jnp.transpose(out_t[:, :B])                    # (B, NUM_CLASSES)


if __name__ == "__main__":
    key = jax.random.PRNGKey(0)
    kx, kw, kb = jax.random.split(key, 3)

    B = 8
    # Inputs emulate MinMaxScaler((30, 45)) output: uniform in [30, 45].
    x = jax.random.uniform(kx, (B, INPUT_SIZE), dtype=jnp.float32,
                           minval=30.0, maxval=45.0)

    # nn.Linear(INPUT_SIZE, 2) default init: U(-1/sqrt(fan_in), 1/sqrt(fan_in)).
    bound = 1.0 / (INPUT_SIZE ** 0.5)
    w = jax.random.uniform(kw, (NUM_CLASSES, INPUT_SIZE), dtype=jnp.float32,
                           minval=-bound, maxval=bound)
    b = jax.random.uniform(kb, (NUM_CLASSES,), dtype=jnp.float32,
                           minval=-bound, maxval=bound)

    out = jax.block_until_ready(seqnet_forward(x, w, b))
    assert out.shape == (B, NUM_CLASSES)

    # Pure-JAX reference of the same forward pass.
    xt_ref = _TSK_A * x * x + _TSK_B * x + _TSK_C
    ref = jax.nn.log_softmax(jnp.abs(xt_ref @ w.T + b), axis=1)
    assert bool(jnp.allclose(out, ref, atol=1e-4, rtol=1e-4))

    # Sanity: log-softmax rows must (approximately) exponentiate-sum to 1.
    row_sums = jnp.sum(jnp.exp(out), axis=1)
    assert bool(jnp.all(jnp.abs(row_sums - 1.0) < 1e-4))

    print("KERNEL_OK")
</pallas_src>

<mosaic_0001>
module attributes {stable_mosaic.version = 11 : i64} {
  func.func @seqnet_kernel(%arg0: i32, %arg1: memref<30x128xf32, #tpu.memory_space<vmem>>, %arg2: memref<2x30xf32, #tpu.memory_space<vmem>>, %arg3: memref<2x1xf32, #tpu.memory_space<vmem>>, %arg4: memref<2x128xf32, #tpu.memory_space<vmem>>) attributes {dimension_semantics = [#tpu.dimension_semantics<parallel>], iteration_bounds = array<i64: 1>, scalar_prefetch = 0 : i64, scratch_operands = 0 : i64, tpu.core_type = #tpu.core_type<tc>, window_params = [{transform_indices = @transform_0, window_bounds = array<i64: 30, 128>}, {pipeline_mode = #tpu.pipeline_mode<synchronous>, transform_indices = @transform_1, window_bounds = array<i64: 2, 30>}, {pipeline_mode = #tpu.pipeline_mode<synchronous>, transform_indices = @transform_2, window_bounds = array<i64: 2, 1>}, {transform_indices = @transform_3, window_bounds = array<i64: 2, 128>}]} {
    %c0 = arith.constant 0 : index
    %c0_0 = arith.constant 0 : index
    %0 = vector.load %arg1[%c0, %c0_0] : memref<30x128xf32, #tpu.memory_space<vmem>>, vector<30x128xf32>
    %cst = arith.constant -2.000000e-03 : f32
    %1 = vector.broadcast %cst : f32 to vector<30x128xf32>
    %2 = arith.mulf %1, %0 : vector<30x128xf32>
    %3 = arith.mulf %2, %0 : vector<30x128xf32>
    %cst_1 = arith.constant 2.000000e-01 : f32
    %4 = vector.broadcast %cst_1 : f32 to vector<30x128xf32>
    %5 = arith.mulf %4, %0 : vector<30x128xf32>
    %6 = arith.addf %3, %5 : vector<30x128xf32>
    %cst_2 = arith.constant -3.000000e+00 : f32
    %7 = vector.broadcast %cst_2 : f32 to vector<30x128xf32>
    %8 = arith.addf %6, %7 : vector<30x128xf32>
    %c0_3 = arith.constant 0 : index
    %c0_4 = arith.constant 0 : index
    %9 = vector.load %arg2[%c0_3, %c0_4] : memref<2x30xf32, #tpu.memory_space<vmem>>, vector<2x30xf32>
    %cst_5 = arith.constant dense<0.000000e+00> : vector<2x128xf32>
    %10 = tpu.matmul %9, %8, %cst_5 {dimension_numbers = #tpu.dot_dimension_numbers<[1], [0], [0], [1], [0, 0, 1, 1], [], []>} : vector<2x30xf32>, vector<30x128xf32>, vector<2x128xf32> -> vector<2x128xf32>
    %c0_6 = arith.constant 0 : index
    %c0_7 = arith.constant 0 : index
    %11 = vector.load %arg3[%c0_6, %c0_7] : memref<2x1xf32, #tpu.memory_space<vmem>>, vector<2x1xf32>
    %12 = vector.broadcast %11 : vector<2x1xf32> to vector<2x128xf32>
    %13 = arith.addf %10, %12 : vector<2x128xf32>
    %14 = math.absf %13 : vector<2x128xf32>
    %15 = vector.extract_strided_slice %14 {offsets = [0, 0], sizes = [1, 128], strides = [1, 1]} : vector<2x128xf32> to vector<1x128xf32>
    %16 = vector.extract_strided_slice %14 {offsets = [1, 0], sizes = [1, 128], strides = [1, 1]} : vector<2x128xf32> to vector<1x128xf32>
    %17 = arith.maximumf %15, %16 : vector<1x128xf32>
    %18 = arith.subf %15, %16 : vector<1x128xf32>
    %19 = math.absf %18 : vector<1x128xf32>
    %cst_8 = arith.constant 0.000000e+00 : f32
    %20 = vector.broadcast %cst_8 : f32 to vector<1x128xf32>
    %21 = arith.subf %20, %19 : vector<1x128xf32>
    %22 = math.exp %21 : vector<1x128xf32>
    %cst_9 = arith.constant 1.000000e+00 : f32
    %23 = vector.broadcast %cst_9 : f32 to vector<1x128xf32>
    %24 = arith.addf %23, %22 : vector<1x128xf32>
    %25 = math.log %24 : vector<1x128xf32>
    %26 = arith.addf %17, %25 : vector<1x128xf32>
    %27 = vector.broadcast %26 : vector<1x128xf32> to vector<2x128xf32>
    %28 = arith.subf %14, %27 : vector<2x128xf32>
    %c0_10 = arith.constant 0 : index
    %c0_11 = arith.constant 0 : index
    %29 = vector.load %arg4[%c0_10, %c0_11] : memref<2x128xf32, #tpu.memory_space<vmem>>, vector<2x128xf32>
    tpu.vector_store %arg4[%c0_10, %c0_11], %28 {strides = array<i32>} : memref<2x128xf32, #tpu.memory_space<vmem>>, vector<2x128xf32>,
    return
  }
  func.func @transform_0(%arg0: i32) -> (i32, i32) {
    %c0_i32 = arith.constant 0 : i32
    %c0_i32_0 = arith.constant 0 : i32
    return %c0_i32, %arg0 : i32, i32
  }
  func.func @transform_1(%arg0: i32) -> (i32, i32) {
    %c0_i32 = arith.constant 0 : i32
    %c0_i32_0 = arith.constant 0 : i32
    %c0_i32_1 = arith.constant 0 : i32
    return %c0_i32, %c0_i32_0 : i32, i32
  }
  func.func @transform_2(%arg0: i32) -> (i32, i32) {
    %c0_i32 = arith.constant 0 : i32
    %c0_i32_0 = arith.constant 0 : i32
    %c0_i32_1 = arith.constant 0 : i32
    return %c0_i32, %c0_i32_0 : i32, i32
  }
  func.func @transform_3(%arg0: i32) -> (i32, i32) {
    %c0_i32 = arith.constant 0 : i32
    %c0_i32_0 = arith.constant 0 : i32
    return %c0_i32, %arg0 : i32, i32
  }
}

</mosaic_0001>

<bundles_post_ra>
// kernel: seqnet_forward.1
= control target key start
LH: loop header
LB: loop body
LE: loop exit
PB: predicated region body
PF: predicated region fallthrough
CT: control target
= control target key end

     0   :  { %v182_v0 = vmov 0.0|0.0   ;;  %vm183_vm0 = vmmov 0   ;;  %v184_v7 = vmov 0.0   ;;  %v185_v8 = vmov 0   ;;  %s228_s0 = inlined_call_operand.vmem [shape: f32[30,128], index: 0, kind: input, shape index: {}]   ;;  %s229_s2 = inlined_call_operand.vmem [shape: f32[2,1], index: 2, kind: input, shape index: {}]   ;;  %s230_s1 = inlined_call_operand.vmem [shape: f32[2,30], index: 1, kind: input, shape index: {}]   ;;  %s231_s3 = inlined_call_operand.vmem [shape: f32[2,128], index: 3, kind: output, shape index: {}]  }
   0x1   :  { %165 = vmatprep.subr.bf16.mxu0 %v182_v0  ;;  %v14_v1 = vld [vmem:[%s228_s0] sm:$0xff]  ;;  %v15_v2 = vld [vmem:[%s228_s0 + $0x8] sm:$0xff]  ;;  %v16_v3 = vld [vmem:[%s228_s0 + $0x10] sm:$0xff]  ;;  %162 = vmatprep.mubr.msk.f32.mxu0 %vm183_vm0, %v184_v7  ;;  %vm49_vm1 = vcmask 1045504   ;;  %vm186_vm2 = vmmov 1   ;;  %vm45_vm4 = vcmask 244736   ;;  %v137_v43 = vlaneseq }
   0x2   :  { %v18_v4 = vmul.f32 -0.002, %v14_v1  ;;  %v19_v5 = vmul.f32 -0.002, %v15_v2  ;;  %v26_v6 = vmul.f32 0.2, %v14_v1  ;;  %177 = vset.pattern.permute.xlu0 %v185_v8  ;;  %vm170_vm3 = vmpackc.low %vm49_vm1, %vm186_vm2 }
   0x3   :  { %v27_v9 = vmul.f32 0.2, %v15_v2  ;;  %v17_v10 = vld [vmem:[%s228_s0 + $0x18] sm:$0x3f]  ;;  %v20_v11 = vmul.f32 -0.002, %v16_v3 }
   0x4   :  { %v22_v12 = vmul.f32 %v18_v4, %v14_v1  ;;  %v23_v13 = vmul.f32 %v19_v5, %v15_v2  ;;  %v21_v14 = vmul.f32 -0.002, %v17_v10  ;;  %v28_v15 = vmul.f32 0.2, %v16_v3  ;;  %v39_v18 = vld [vmem:[%s229_s2] sm:$0x3] }
   0x5   :  { %v24_v16 = vmul.f32 %v20_v11, %v16_v3  ;;  %v29_v17 = vmul.f32 0.2, %v17_v10  ;;  %42 = vperm.xlu0 %177, %v39_v18   ;;  %v38_v30 = vld [vmem:[%s230_s1] sm:$0x3]  ;;  %v138_v44 = vshrl.u32 %v137_v43, 7 }
   0x6   :  { %v30_v19 = vadd.f32 %v26_v6, %v22_v12  ;;  %v31_v20 = vadd.f32 %v27_v9, %v23_v13  ;;  %v25_v21 = vmul.f32 %v21_v14, %v17_v10 }
   0x7   :  { %v32_v22 = vadd.f32 %v28_v15, %v24_v16  ;;  %v139_v48 = vsub.s32 0, %v138_v44 }
   0x8   :  { %v34_v23 = vadd.f32 -3.0, %v30_v19  ;;  %v35_v24 = vadd.f32 -3.0, %v31_v20  ;;  %v33_v25 = vadd.f32 %v29_v17, %v25_v21 }
   0x9   :  { %v36_v26 = vadd.f32 -3.0, %v32_v22 }
   0xa   :  { %v166_v27 = vpack.c.bf16 %v35_v24, %v34_v23  ;;  %v37_v28 = vadd.f32 -3.0, %v33_v25 }
   0xc   :  { %167 = vmatpush3.bf16.msra.mxu0 %v166_v27  ;;  %v169_v29 = vpack.c.bf16 %v37_v28, %v36_v26 }
   0xd   :  { %168 = vmatprep.subr.bf16.mxu0 %v182_v0 }
  0x10   :  { %171 = vmatpush3.bf16.msk.msra.mxu0 %vm170_vm3, %v169_v29 }
  0x13   :  { %163 = vmatmul.mubr.msk.f32.vlgmr.msra.gmra.mrb[0].mxu0 %vm45_vm4, %v38_v30 }
  0x84   :  { %v43_v31 = vpop.permute.xlu0 %42 }
  0xe6   :  { %v119_v32 = vpop.f32.mrb[0].mxu0 }
  0xe7   :  { %v120_v33 = vadd.f32 %v119_v32, %v43_v31  ;;  %v164_v34 = vpop.f32.mrb[1].mxu0 }
  0xe9   :  { %v123_v35 = vand.u32 2147483647, %v120_v33 }
  0xeb   :  { %v125_v36 = vrot.slane %v123_v35, 1 }
  0xed   :  { %v128_v37 = vsub.f32 %v123_v35, %v125_v36  ;;  %v127_v46 = vmax.f32 %v123_v35, %v125_v36 }
  0xef   :  { %v129_v38 = vand.u32 2147483647, %v128_v37 }
  0xf1   :  { %v130_v39 = vsub.f32 0.0, %v129_v38 }
  0xf3   :  { %v131_v40 = vmul.f32 1.442695, %v130_v39 }
  0xf5   :  { %178 = vpow2.f32 %v131_v40 }
  0xff   :  { %v179_v41 = vpop.eup %178 }
 0x100   :  { %v133_v42 = vadd.f32 1.0, %v179_v41 }
 0x102   :  { %180 = vlog2.f32 %v133_v42 }
 0x10c   :  { %v181_v45 = vpop.eup %180 }
 0x10d   :  { %v135_v47 = vmul.f32 0.6931472, %v181_v45 }
 0x10f   :  { %v136_v49 = vadd.f32 %v135_v47, %v127_v46 }
 0x111   :  { %v140_v50 = vrot.slane %v136_v49, %v139_v48 }
 0x113   :  { %v141_v51 = vsub.f32 %v123_v35, %v140_v50 }
 0x115   :  { %142 = vst [vmem:[%s231_s3] sm:$0x3] %v141_v51 }

</bundles_post_ra>
